<compile_context>
chip_gen: v5e
topology: v5e:2x2
jax: 0.10.0
libtpu: 0.0.40
codegen_flags: <defaults>
</compile_context>

<pallas_src>
import math
import functools

import jax
import jax.numpy as jnp
from jax.experimental import pallas as pl
from jax.experimental.pallas import tpu as pltpu


# ----------------------------------------------------------------------------
# Parameter / buffer setup (plain JAX) -- mirrors nn.Module.__init__
# ----------------------------------------------------------------------------
def make_pe_table(max_len: int, d_model: int, dtype=jnp.float32):
    """Deterministic sinusoidal table, shape [max_len, d_model]."""
    position = jnp.arange(max_len, dtype=jnp.float32)[:, None]            # [L, 1]
    div_term = jnp.exp(
        jnp.arange(0, d_model, 2, dtype=jnp.float32) * (-math.log(10000.0) / d_model)
    )                                                                      # [D/2]
    pe = jnp.zeros((max_len, d_model), dtype=jnp.float32)
    pe = pe.at[:, 0::2].set(jnp.sin(position * div_term))
    pe = pe.at[:, 1::2].set(jnp.cos(position * div_term))
    return pe.astype(dtype)


# ----------------------------------------------------------------------------
# Tile selection: ~2 MiB blocks, valid under the (8, 128) block constraint.
# ----------------------------------------------------------------------------
def _choose_tiles(B, SD, itemsize, target_bytes=2 << 20):
    if B * SD * itemsize <= target_bytes:
        return B, SD                      # whole problem in one block
    row_bytes = SD * itemsize
    tb = target_bytes // row_bytes        # rows of SD that fit in the target
    if tb >= B:
        tb = B                            # full batch dim -> always valid
    elif tb >= 8:
        tb = (tb // 8) * 8                # sub-batch tile must be mult of 8
    else:
        tb = min(B, 8)                    # either full B (<8) or 8
    tc = (target_bytes // (tb * itemsize)) // 128 * 128
    tc = max(128, tc)                     # lane-dense multiple of 128
    if tc >= SD:
        tc = SD                           # full last dim -> always valid
    return int(tb), int(tc)


# ----------------------------------------------------------------------------
# Pallas kernels
# ----------------------------------------------------------------------------
def _pe_add_kernel(x_ref, pe_ref, o_ref):
    # x_ref: (TB, TC); pe_ref: (1, TC) broadcast over rows. Single VPU add.
    o_ref[...] = x_ref[...] + pe_ref[...]


def _pe_add_dropout_kernel(seed_ref, x_ref, pe_ref, o_ref, *, keep_thresh, inv_keep):
    # Inverted dropout with the TPU hardware PRNG; unique stream per tile.
    pid = pl.program_id(0) * pl.num_programs(1) + pl.program_id(1)
    pltpu.prng_seed(seed_ref[0] + pid)
    bits = pltpu.prng_random_bits(x_ref.shape)            # uint32 per element
    keep = bits >= jnp.uint32(keep_thresh)                # P(keep) = 1 - p
    val = x_ref[...] + pe_ref[...]
    o_ref[...] = jnp.where(keep, val * jnp.asarray(inv_keep, val.dtype),
                           jnp.zeros_like(val))


# ----------------------------------------------------------------------------
# Wrapper
# ----------------------------------------------------------------------------
def positional_encoding(x, pe_table, *, dropout_p=0.1, training=False, seed=0):
    """x: [B, S, D]; returns x + pe[:S] (with inverted dropout if training)."""
    B, S, D = x.shape
    SD = S * D

    # Lane-dense 2-D views: rows = batch, columns = flattened (seq, d_model).
    x2 = x.reshape(B, SD)
    pe2 = pe_table[:S].astype(x.dtype).reshape(1, SD)     # pre-cast, pre-shaped

    tb, tc = _choose_tiles(B, SD, x.dtype.itemsize)
    # Column tiles on the OUTER grid axis so the PE block index is constant
    # across consecutive (inner) row steps -> Pallas skips re-DMAing PE.
    grid = (pl.cdiv(SD, tc), pl.cdiv(B, tb))

    compiler_params = pltpu.CompilerParams(
        dimension_semantics=("parallel", "parallel"))
    out_shape = jax.ShapeDtypeStruct((B, SD), x.dtype)

    if (not training) or dropout_p <= 0.0:
        out2 = pl.pallas_call(
            _pe_add_kernel,
            out_shape=out_shape,
            grid_spec=pltpu.PrefetchScalarGridSpec(
                num_scalar_prefetch=0,
                grid=grid,
                in_specs=[
                    pl.BlockSpec((tb, tc), lambda j, i: (i, j)),
                    pl.BlockSpec((1, tc), lambda j, i: (0, j)),
                ],
                out_specs=pl.BlockSpec((tb, tc), lambda j, i: (i, j)),
            ),
            compiler_params=compiler_params,
        )(x2, pe2)
        return out2.reshape(B, S, D)

    if dropout_p >= 1.0:
        # Everything dropped; avoid uint32 wraparound and 1/(1-p) divide-by-0.
        return jnp.zeros_like(x)

    # Training mode: same distribution / inverted-dropout scaling as torch,
    # but not bit-identical to torch's RNG stream.
    keep_thresh = min(int(round(dropout_p * 4294967296.0)), 4294967295)
    inv_keep = 1.0 / (1.0 - dropout_p)
    kernel = functools.partial(_pe_add_dropout_kernel,
                               keep_thresh=keep_thresh, inv_keep=inv_keep)
    seed_arr = jnp.array([seed], dtype=jnp.int32)
    out2 = pl.pallas_call(
        kernel,
        out_shape=out_shape,
        grid_spec=pltpu.PrefetchScalarGridSpec(
            num_scalar_prefetch=1,
            grid=grid,
            in_specs=[
                pl.BlockSpec((tb, tc), lambda j, i, seed: (i, j)),
                pl.BlockSpec((1, tc), lambda j, i, seed: (0, j)),
            ],
            out_specs=pl.BlockSpec((tb, tc), lambda j, i, seed: (i, j)),
        ),
        compiler_params=compiler_params,
    )(seed_arr, x2, pe2)
    return out2.reshape(B, S, D)


# ----------------------------------------------------------------------------
# Main
# ----------------------------------------------------------------------------
if __name__ == "__main__":
    # Small shapes consistent with the module: batch=2, seq=8, d_model=32.
    B, S, D = 2, 8, 32
    MAX_LEN = 64

    key = jax.random.PRNGKey(0)
    x = jax.random.normal(key, (B, S, D), dtype=jnp.float32)
    pe_table = make_pe_table(MAX_LEN, D, dtype=jnp.float32)

    # Eval mode (dropout = identity), matching module.eval() semantics.
    out = positional_encoding(x, pe_table, dropout_p=0.1, training=False)
    out = jax.block_until_ready(out)
    ref = x + pe_table[:S][None, :, :]
    assert out.shape == (B, S, D)
    assert jnp.allclose(out, ref, atol=1e-6, rtol=1e-6), "mismatch vs reference"

    # Second check exercising the multi-tile path (PE column tiling + reuse).
    B2, S2, D2 = 4, 256, 1024
    pe_table2 = make_pe_table(S2, D2, dtype=jnp.float32)
    x2 = jax.random.normal(jax.random.PRNGKey(1), (B2, S2, D2), dtype=jnp.float32)
    out2 = jax.block_until_ready(
        positional_encoding(x2, pe_table2, dropout_p=0.1, training=False))
    ref2 = x2 + pe_table2[:S2][None, :, :]
    assert jnp.allclose(out2, ref2, atol=1e-5, rtol=1e-5), "mismatch (tiled path)"

    # TODO(synk): training-mode dropout uses the TPU hardware PRNG, so it
    # matches torch's dropout distribution but not its exact RNG stream; not
    # exercised in this deterministic check.

    print("KERNEL_OK")
</pallas_src>

<mosaic_0001>
module attributes {stable_mosaic.version = 11 : i64} {
  func.func @_pe_add_kernel(%arg0: i32, %arg1: i32, %arg2: memref<2x256xf32, #tpu.memory_space<vmem>>, %arg3: memref<1x256xf32, #tpu.memory_space<vmem>>, %arg4: memref<2x256xf32, #tpu.memory_space<vmem>>) attributes {dimension_semantics = [#tpu.dimension_semantics<parallel>, #tpu.dimension_semantics<parallel>], iteration_bounds = array<i64: 1, 1>, scalar_prefetch = 0 : i64, scratch_operands = 0 : i64, tpu.core_type = #tpu.core_type<tc>, window_params = [{transform_indices = @transform_0, window_bounds = array<i64: 2, 256>}, {transform_indices = @transform_1, window_bounds = array<i64: 1, 256>}, {transform_indices = @transform_2, window_bounds = array<i64: 2, 256>}]} {
    %c0 = arith.constant 0 : index
    %c0_0 = arith.constant 0 : index
    %0 = vector.load %arg2[%c0, %c0_0] : memref<2x256xf32, #tpu.memory_space<vmem>>, vector<2x256xf32>
    %c0_1 = arith.constant 0 : index
    %c0_2 = arith.constant 0 : index
    %1 = vector.load %arg3[%c0_1, %c0_2] : memref<1x256xf32, #tpu.memory_space<vmem>>, vector<1x256xf32>
    %2 = vector.broadcast %1 : vector<1x256xf32> to vector<2x256xf32>
    %3 = arith.addf %0, %2 : vector<2x256xf32>
    %c0_3 = arith.constant 0 : index
    %c0_4 = arith.constant 0 : index
    %4 = vector.load %arg4[%c0_3, %c0_4] : memref<2x256xf32, #tpu.memory_space<vmem>>, vector<2x256xf32>
    tpu.vector_store %arg4[%c0_3, %c0_4], %3 {strides = array<i32>} : memref<2x256xf32, #tpu.memory_space<vmem>>, vector<2x256xf32>,
    return
  }
  func.func @transform_0(%arg0: i32, %arg1: i32) -> (i32, i32) {
    %c0_i32 = arith.constant 0 : i32
    return %arg1, %arg0 : i32, i32
  }
  func.func @transform_1(%arg0: i32, %arg1: i32) -> (i32, i32) {
    %c0_i32 = arith.constant 0 : i32
    %c0_i32_0 = arith.constant 0 : i32
    return %c0_i32, %arg0 : i32, i32
  }
  func.func @transform_2(%arg0: i32, %arg1: i32) -> (i32, i32) {
    %c0_i32 = arith.constant 0 : i32
    return %arg1, %arg0 : i32, i32
  }
}

</mosaic_0001>

<bundles_post_ra>
// kernel: tpu_custom_call.1
= control target key start
LH: loop header
LB: loop body
LE: loop exit
PB: predicated region body
PF: predicated region fallthrough
CT: control target
= control target key end

     0   :  { %7 = vsyncpa [#allocation3], 0  ;;  %s177_s0 = inlined_call_operand.hbm [shape: f32[2,256], index: 0, kind: input, shape index: {}]   ;;  %s178_s1 = inlined_call_operand.hbm [shape: f32[1,256], index: 1, kind: input, shape index: {}]   ;;  %s179_s2 = inlined_call_operand.hbm [shape: f32[2,256], index: 2, kind: output, shape index: {}]  }
   0x1   :  { %8 = vsyncpa [#allocation6], 0 }
   0x2   :  { %9 = vsyncpa [#allocation4], 0  ;;  %s15_s11 = sshll.u32 %s177_s0, 4  ;;  %s150_s12 = smov [#allocation2]   ;;  %s16_s11 = int_to_ptr.hbm [resolvable:$true] %s15_s11 }
   0x3   :  { %s17_s13 = sshll.u32 %s150_s12, 4  ;;  %s26_s16 = sshll.u32 %s178_s1, 4  ;;  %s18_s13 = int_to_ptr.vmem [resolvable:$true] %s17_s13  ;;  %s27_s16 = int_to_ptr.hbm [resolvable:$true] %s26_s16 }
   0x4   :  { %20 = dma.hbm_to_vmem [thread:$0]  %s16_s11, 64, %s18_s13, [#allocation3]  }
   0x5   :  { %s151_s17 = smov [#allocation5]  }
   0x6   :  { %s28_s18 = sshll.u32 %s151_s17, 4  ;;  %s29_s18 = int_to_ptr.vmem [resolvable:$true] %s28_s18 }
   0x7   :  { %31 = dma.hbm_to_vmem [thread:$0]  %s27_s16, 32, %s29_s18, [#allocation6]  }
   0x8   :  { %144 = dma.done.wait [#allocation3], 64  }
   0x9   :  { %145 = vsyncadd [#allocation3], 4294967232 }
   0xa   :  { %146 = dma.done.wait [#allocation6], 32  }
   0xb   :  { %147 = vsyncadd [#allocation6], 4294967264  ;;  %v41_v0 = vld [vmem:[#allocation5] sm:$0x3]  ;;  %vm46_vm0 = vcmask 1041408   ;;  %s152_s0 = smov [#allocation7]  }
   0xc   :  { %v43_v1 = vperm.slane %v41_v0, 0  ;;  %v44_v2 = vperm.slane %v41_v0, 1  ;;  %v40_v3 = vld [vmem:[#allocation2] sm:$0xf]  ;;  %s56_s19 = sshll.u32 %s152_s0, 4  ;;  %s58_s21 = sshll.u32 %s179_s2, 4  ;;  %s57_s19 = int_to_ptr.vmem [resolvable:$true] %s56_s19  ;;  %s59_s21 = int_to_ptr.hbm [resolvable:$true] %s58_s21 }
   0xe   :  { %v45_v4 = vrot.slane %v44_v2, 6 }
  0x10   :  { %v47_v5 = vsel %vm46_vm0, %v43_v1, %v45_v4 }
  0x11   :  { %v49_v6 = vadd.f32 %v47_v5, %v40_v3 }
  0x13   :  { %50 = vst [vmem:[#allocation7] sm:$0xf] %v49_v6 }
  0x14   :  { %61 = dma.vmem_to_hbm [thread:$0]  %s57_s19, 64, %s59_s21, [#allocation4]  }
  0x15   :  { %148 = dma.done.wait [#allocation4], 64  }
  0x16   :  { %149 = vsyncadd [#allocation4], 4294967232 }
  0x17   :  { %66 = vsyncpa [#allocation3], 1 }
  0x18   :  { %67 = vsyncpa [#allocation6], 1 }
  0x19   :  { %68 = vsyncpa [#allocation4], 1 }

</bundles_post_ra>
